<compile_context>
chip_gen: v7x
topology: tpu7x:2x2x1
jax: 0.10.0
libtpu: 0.0.40
codegen_flags: <defaults>
</compile_context>

<pallas_src>
import functools

import jax
import jax.numpy as jnp
from jax.experimental import pallas as pl
from jax.experimental.pallas import tpu as pltpu


def _image_proj_kernel(x_ref, w_ref, b_ref, gamma_ref, beta_ref, o_ref, *,
                       tokens_per_tile, d):
    # x_ref:     (TB, K)      input embeddings tile (bf16/f32)
    # w_ref:     (K, TT*D)    projection weight slice covering TT tokens
    # b_ref:     (1, TT*D)    projection bias slice (f32)
    # gamma_ref: (1, D)       LayerNorm weight (f32)
    # beta_ref:  (1, D)       LayerNorm bias (f32)
    # o_ref:     (TB, TT*D)   output slab (lane-dense, TT tokens wide)

    # One wide MXU matmul; inputs consumed in their native dtype, f32 accumulate.
    y = jnp.dot(x_ref[...], w_ref[...], preferred_element_type=jnp.float32)
    y = y + b_ref[...].astype(jnp.float32)

    gamma = gamma_ref[...].astype(jnp.float32)
    beta = beta_ref[...].astype(jnp.float32)
    eps = 1e-5

    # Per-token LayerNorm over lane-aligned, D-wide column slices of the slab.
    # Static unrolled loop over the (small) token count; each normalized slice
    # is stored directly (no concatenate -> no second full-slab f32 copy).
    for t in range(tokens_per_tile):
        yt = y[:, t * d:(t + 1) * d]
        mean = jnp.mean(yt, axis=-1, keepdims=True)
        centered = yt - mean
        var = jnp.mean(centered * centered, axis=-1, keepdims=True)
        out_t = centered * jax.lax.rsqrt(var + eps) * gamma + beta
        o_ref[:, t * d:(t + 1) * d] = out_t.astype(o_ref.dtype)


def _tpu_vmem_bytes():
    """Best-effort query of per-core VMEM capacity; conservative fallback."""
    try:
        info = pltpu.get_tpu_info()
        vmem = int(getattr(info, "vmem_capacity_bytes", 0))
        if vmem > 0:
            return vmem
    except Exception:
        pass
    return 64 << 20  # conservative (v7x-sized)


def _choose_tokens_per_tile(T, D, K, w_itemsize, max_tile_bytes, prefer_split):
    """Largest token count per N-tile whose weight slice fits the per-buffer
    budget.  Only demote to >=2 N tiles when `prefer_split` (v7x megacore with
    no batch-axis parallelism to shard)."""
    divisors = [t for t in range(1, T + 1) if T % t == 0]
    fitting = [t for t in divisors if K * t * D * w_itemsize <= max_tile_bytes]
    if not fitting:
        fitting = [1]
    best = max(fitting)
    if prefer_split and best == T and T > 1:
        smaller = [t for t in fitting if t <= T // 2]
        if smaller:
            best = max(smaller)
    return best


def image_proj_model(image_embeds, proj_w, proj_b, ln_gamma, ln_beta, *,
                     clip_extra_context_tokens, cross_attention_dim,
                     out_dtype=jnp.bfloat16):
    """Fused Linear + reshape + per-token LayerNorm.

    image_embeds: (B, clip_embeddings_dim)          (bf16 or f32)
    proj_w:       (clip_embeddings_dim, T * D)      (bf16 or f32)
    proj_b:       (T * D,)                          (f32)
    ln_gamma/ln_beta: (D,)                          (f32)
    returns:      (B, T, D) in out_dtype

    Note: the matmul consumes inputs in their stored dtype (bf16 -> MXU-native,
    half the HBM weight traffic) with f32 accumulation; this differs from a
    pure-f32 PyTorch path at ~bf16 precision level.
    """
    B, K = image_embeds.shape
    T = clip_extra_context_tokens
    D = cross_attention_dim
    assert proj_w.shape == (K, T * D)
    assert D % 128 == 0, "cross_attention_dim must be a multiple of 128"

    # Generation-aware budgets.
    vmem_bytes = _tpu_vmem_bytes()
    big_vmem = vmem_bytes >= (128 << 20)          # v5e / v6e
    two_tc = vmem_bytes <= (64 << 20)             # v7x-like (2 TCs per chip)
    max_tile_bytes = (20 << 20) if big_vmem else (8 << 20)
    vmem_cap = (96 << 20) if big_vmem else (48 << 20)

    # Batch tile rounded to the dtype-native sublane packing
    # (f32 -> 8 rows, bf16 -> 16, int8/fp8 -> 32) so loads/stores are unmasked.
    x_itemsize = jnp.dtype(image_embeds.dtype).itemsize
    sub = max(8, 32 // max(1, x_itemsize))
    tb = min(pl.cdiv(B, sub) * sub, 256)
    Bp = pl.cdiv(B, tb) * tb
    if Bp != B:
        x = jnp.zeros((Bp, K), image_embeds.dtype).at[:B].set(image_embeds)
    else:
        x = image_embeds
    num_b = Bp // tb

    # Only force a >=2-way N split on 2-TC chips when the batch axis doesn't
    # already give the megacore something to shard.
    prefer_split = two_tc and (num_b == 1)
    w_itemsize = jnp.dtype(proj_w.dtype).itemsize
    tpt = _choose_tokens_per_tile(T, D, K, w_itemsize, max_tile_bytes,
                                  prefer_split)
    n_tile = tpt * D
    num_n = T // tpt

    # Reshape 1-D params to 2-D so they map cleanly to VMEM tiles.
    b2 = proj_b.reshape(1, T * D).astype(jnp.float32)
    g2 = ln_gamma.reshape(1, D).astype(jnp.float32)
    be2 = ln_beta.reshape(1, D).astype(jnp.float32)

    kernel = functools.partial(_image_proj_kernel, tokens_per_tile=tpt, d=D)

    out_itemsize = jnp.dtype(out_dtype).itemsize

    # Pick the grid order that minimizes total HBM traffic:
    #   weight-outer: x streamed num_n times, W once.
    #   batch-outer:  x streamed once, W streamed num_b times.
    x_bytes = Bp * K * x_itemsize
    w_bytes = K * T * D * w_itemsize
    weight_outer = (x_bytes * num_n + w_bytes) <= (x_bytes + w_bytes * num_b)

    if weight_outer:
        grid = (num_n, num_b)
        x_map = lambda j, i: (i, 0)
        w_map = lambda j, i: (0, j)
        p_map = lambda j, i: (0, j)
        c_map = lambda j, i: (0, 0)
        o_map = lambda j, i: (i, j)
    else:
        grid = (num_b, num_n)
        x_map = lambda i, j: (i, 0)
        w_map = lambda i, j: (0, j)
        p_map = lambda i, j: (0, j)
        c_map = lambda i, j: (0, 0)
        o_map = lambda i, j: (i, j)

    # Accurate double-buffered VMEM sizing (Pallas uses 2 buffers per operand),
    # plus headroom, bounded by a generation-appropriate cap.
    tile_bytes = (tb * K * x_itemsize
                  + K * n_tile * w_itemsize
                  + n_tile * 4
                  + 2 * D * 4
                  + tb * n_tile * out_itemsize)
    vmem_limit = int(min(max(2 * tile_bytes + (4 << 20), 16 << 20), vmem_cap))

    cost = pl.CostEstimate(
        flops=2 * Bp * K * T * D,
        transcendentals=0,
        bytes_accessed=(x.size * x_itemsize
                        + proj_w.size * w_itemsize
                        + b2.size * 4 + g2.size * 4 + be2.size * 4
                        + Bp * T * D * out_itemsize))

    out2d = pl.pallas_call(
        kernel,
        out_shape=jax.ShapeDtypeStruct((Bp, T * D), out_dtype),
        grid_spec=pltpu.PrefetchScalarGridSpec(
            num_scalar_prefetch=0,
            grid=grid,
            in_specs=[
                pl.BlockSpec((tb, K), x_map),        # x tile
                pl.BlockSpec((K, n_tile), w_map),    # W tile (TT tokens wide)
                pl.BlockSpec((1, n_tile), p_map),    # bias tile
                pl.BlockSpec((1, D), c_map),         # ln gamma
                pl.BlockSpec((1, D), c_map),         # ln beta
            ],
            out_specs=pl.BlockSpec((tb, n_tile), o_map),
        ),
        compiler_params=pltpu.CompilerParams(
            dimension_semantics=("parallel", "parallel"),
            vmem_limit_bytes=vmem_limit),
        cost_estimate=cost,
    )(x, proj_w, b2, g2, be2)

    return out2d[:B].reshape(B, T, D)


def _reference(image_embeds, proj_w, proj_b, ln_gamma, ln_beta, T, D):
    # Same math in plain JAX: upcast the (possibly bf16) matmul inputs to f32.
    y = image_embeds.astype(jnp.float32) @ proj_w.astype(jnp.float32) + proj_b
    y = y.reshape(-1, T, D)
    mean = jnp.mean(y, axis=-1, keepdims=True)
    var = jnp.mean((y - mean) ** 2, axis=-1, keepdims=True)
    return (y - mean) / jnp.sqrt(var + 1e-5) * ln_gamma + ln_beta


if __name__ == "__main__":
    # Small shapes consistent with the module's forward (defaults scaled down).
    B = 2
    clip_embeddings_dim = 256
    cross_attention_dim = 128
    clip_extra_context_tokens = 4

    key = jax.random.PRNGKey(0)
    k1, k2, k3, k4, k5 = jax.random.split(key, 5)

    # bf16 matmul inputs: MXU-native on v5e/v6e/v7x, halves HBM weight traffic.
    image_embeds = jax.random.normal(
        k1, (B, clip_embeddings_dim), jnp.float32).astype(jnp.bfloat16)
    proj_w = (jax.random.normal(
        k2, (clip_embeddings_dim,
             clip_extra_context_tokens * cross_attention_dim),
        jnp.float32) * 0.02).astype(jnp.bfloat16)
    proj_b = jax.random.normal(
        k3, (clip_extra_context_tokens * cross_attention_dim,),
        jnp.float32) * 0.01
    ln_gamma = 1.0 + 0.1 * jax.random.normal(
        k4, (cross_attention_dim,), jnp.float32)
    ln_beta = 0.1 * jax.random.normal(k5, (cross_attention_dim,), jnp.float32)

    out = image_proj_model(
        image_embeds, proj_w, proj_b, ln_gamma, ln_beta,
        clip_extra_context_tokens=clip_extra_context_tokens,
        cross_attention_dim=cross_attention_dim,
        out_dtype=jnp.bfloat16)
    out = jax.block_until_ready(out)

    ref = _reference(image_embeds, proj_w, proj_b, ln_gamma, ln_beta,
                     clip_extra_context_tokens, cross_attention_dim)
    assert out.shape == (B, clip_extra_context_tokens, cross_attention_dim)
    # bf16 matmul inputs + bf16 output vs f32 reference -> relaxed tolerance.
    assert jnp.allclose(out.astype(jnp.float32), ref, atol=3e-2, rtol=3e-2), \
        "mismatch vs reference"

    print("KERNEL_OK")
</pallas_src>

<mosaic_0001>
module attributes {stable_mosaic.version = 11 : i64} {
  func.func @_image_proj_kernel(%arg0: i32, %arg1: i32, %arg2: memref<16x256xbf16, #tpu.memory_space<vmem>>, %arg3: memref<256x256xbf16, #tpu.memory_space<vmem>>, %arg4: memref<1x256xf32, #tpu.memory_space<vmem>>, %arg5: memref<1x128xf32, #tpu.memory_space<vmem>>, %arg6: memref<1x128xf32, #tpu.memory_space<vmem>>, %arg7: memref<16x256xbf16, #tpu.memory_space<vmem>>) attributes {dimension_semantics = [#tpu.dimension_semantics<parallel>, #tpu.dimension_semantics<parallel>], iteration_bounds = array<i64: 1, 2>, scalar_prefetch = 0 : i64, scratch_operands = 0 : i64, tpu.core_type = #tpu.core_type<tc>, window_params = [{transform_indices = @transform_0, window_bounds = array<i64: 16, 256>}, {transform_indices = @transform_1, window_bounds = array<i64: 256, 256>}, {transform_indices = @transform_2, window_bounds = array<i64: 1, 256>}, {pipeline_mode = #tpu.pipeline_mode<synchronous>, transform_indices = @transform_3, window_bounds = array<i64: 1, 128>}, {pipeline_mode = #tpu.pipeline_mode<synchronous>, transform_indices = @transform_4, window_bounds = array<i64: 1, 128>}, {transform_indices = @transform_5, window_bounds = array<i64: 16, 256>}]} {
    %c0 = arith.constant 0 : index
    %c0_0 = arith.constant 0 : index
    %0 = vector.load %arg2[%c0, %c0_0] : memref<16x256xbf16, #tpu.memory_space<vmem>>, vector<16x256xbf16>
    %c0_1 = arith.constant 0 : index
    %c0_2 = arith.constant 0 : index
    %1 = vector.load %arg3[%c0_1, %c0_2] : memref<256x256xbf16, #tpu.memory_space<vmem>>, vector<256x256xbf16>
    %cst = arith.constant dense<0.000000e+00> : vector<16x256xf32>
    %2 = tpu.matmul %0, %1, %cst {dimension_numbers = #tpu.dot_dimension_numbers<[1], [0], [0], [1], [0, 0, 1, 1], [], []>} : vector<16x256xbf16>, vector<256x256xbf16>, vector<16x256xf32> -> vector<16x256xf32>
    %c0_3 = arith.constant 0 : index
    %c0_4 = arith.constant 0 : index
    %3 = vector.load %arg4[%c0_3, %c0_4] : memref<1x256xf32, #tpu.memory_space<vmem>>, vector<1x256xf32>
    %4 = vector.broadcast %3 : vector<1x256xf32> to vector<16x256xf32>
    %5 = arith.addf %2, %4 : vector<16x256xf32>
    %c0_5 = arith.constant 0 : index
    %c0_6 = arith.constant 0 : index
    %6 = vector.load %arg5[%c0_5, %c0_6] : memref<1x128xf32, #tpu.memory_space<vmem>>, vector<1x128xf32>
    %c0_7 = arith.constant 0 : index
    %c0_8 = arith.constant 0 : index
    %7 = vector.load %arg6[%c0_7, %c0_8] : memref<1x128xf32, #tpu.memory_space<vmem>>, vector<1x128xf32>
    %8 = vector.extract_strided_slice %5 {offsets = [0, 0], sizes = [16, 128], strides = [1, 1]} : vector<16x256xf32> to vector<16x128xf32>
    %cst_9 = arith.constant dense<0.000000e+00> : vector<16xf32>
    %9 = vector.multi_reduction <add>, %8, %cst_9 [1] : vector<16x128xf32> to vector<16xf32>
    %10 = vector.shape_cast %9 : vector<16xf32> to vector<16x1xf32>
    %cst_10 = arith.constant 1.280000e+02 : f32
    %11 = vector.broadcast %cst_10 : f32 to vector<16x1xf32>
    %12 = arith.divf %10, %11 : vector<16x1xf32>
    %13 = vector.broadcast %12 : vector<16x1xf32> to vector<16x128xf32>
    %14 = arith.subf %8, %13 : vector<16x128xf32>
    %15 = arith.mulf %14, %14 : vector<16x128xf32>
    %cst_11 = arith.constant dense<0.000000e+00> : vector<16xf32>
    %16 = vector.multi_reduction <add>, %15, %cst_11 [1] : vector<16x128xf32> to vector<16xf32>
    %17 = vector.shape_cast %16 : vector<16xf32> to vector<16x1xf32>
    %cst_12 = arith.constant 1.280000e+02 : f32
    %18 = vector.broadcast %cst_12 : f32 to vector<16x1xf32>
    %19 = arith.divf %17, %18 : vector<16x1xf32>
    %cst_13 = arith.constant 9.99999974E-6 : f32
    %20 = vector.broadcast %cst_13 : f32 to vector<16x1xf32>
    %21 = arith.addf %19, %20 : vector<16x1xf32>
    %22 = math.rsqrt %21 : vector<16x1xf32>
    %23 = vector.broadcast %22 : vector<16x1xf32> to vector<16x128xf32>
    %24 = arith.mulf %14, %23 : vector<16x128xf32>
    %25 = vector.broadcast %6 : vector<1x128xf32> to vector<16x128xf32>
    %26 = arith.mulf %24, %25 : vector<16x128xf32>
    %27 = vector.broadcast %7 : vector<1x128xf32> to vector<16x128xf32>
    %28 = arith.addf %26, %27 : vector<16x128xf32>
    %29 = arith.truncf %28 : vector<16x128xf32> to vector<16x128xbf16>
    %c0_14 = arith.constant 0 : index
    %c0_15 = arith.constant 0 : index
    %30 = vector.load %arg7[%c0_14, %c0_15] : memref<16x256xbf16, #tpu.memory_space<vmem>>, vector<16x128xbf16>
    tpu.vector_store %arg7[%c0_14, %c0_15], %29 {strides = array<i32>} : memref<16x256xbf16, #tpu.memory_space<vmem>>, vector<16x128xbf16>,
    %31 = vector.extract_strided_slice %5 {offsets = [0, 128], sizes = [16, 128], strides = [1, 1]} : vector<16x256xf32> to vector<16x128xf32>
    %cst_16 = arith.constant dense<0.000000e+00> : vector<16xf32>
    %32 = vector.multi_reduction <add>, %31, %cst_16 [1] : vector<16x128xf32> to vector<16xf32>
    %33 = vector.shape_cast %32 : vector<16xf32> to vector<16x1xf32>
    %cst_17 = arith.constant 1.280000e+02 : f32
    %34 = vector.broadcast %cst_17 : f32 to vector<16x1xf32>
    %35 = arith.divf %33, %34 : vector<16x1xf32>
    %36 = vector.broadcast %35 : vector<16x1xf32> to vector<16x128xf32>
    %37 = arith.subf %31, %36 : vector<16x128xf32>
    %38 = arith.mulf %37, %37 : vector<16x128xf32>
    %cst_18 = arith.constant dense<0.000000e+00> : vector<16xf32>
    %39 = vector.multi_reduction <add>, %38, %cst_18 [1] : vector<16x128xf32> to vector<16xf32>
    %40 = vector.shape_cast %39 : vector<16xf32> to vector<16x1xf32>
    %cst_19 = arith.constant 1.280000e+02 : f32
    %41 = vector.broadcast %cst_19 : f32 to vector<16x1xf32>
    %42 = arith.divf %40, %41 : vector<16x1xf32>
    %cst_20 = arith.constant 9.99999974E-6 : f32
    %43 = vector.broadcast %cst_20 : f32 to vector<16x1xf32>
    %44 = arith.addf %42, %43 : vector<16x1xf32>
    %45 = math.rsqrt %44 : vector<16x1xf32>
    %46 = vector.broadcast %45 : vector<16x1xf32> to vector<16x128xf32>
    %47 = arith.mulf %37, %46 : vector<16x128xf32>
    %48 = vector.broadcast %6 : vector<1x128xf32> to vector<16x128xf32>
    %49 = arith.mulf %47, %48 : vector<16x128xf32>
    %50 = vector.broadcast %7 : vector<1x128xf32> to vector<16x128xf32>
    %51 = arith.addf %49, %50 : vector<16x128xf32>
    %52 = arith.truncf %51 : vector<16x128xf32> to vector<16x128xbf16>
    %c0_21 = arith.constant 0 : index
    %c128 = arith.constant 128 : index
    %53 = vector.load %arg7[%c0_21, %c128] : memref<16x256xbf16, #tpu.memory_space<vmem>>, vector<16x128xbf16>
    tpu.vector_store %arg7[%c0_21, %c128], %52 {strides = array<i32>} : memref<16x256xbf16, #tpu.memory_space<vmem>>, vector<16x128xbf16>,
    return
  }
  func.func @transform_0(%arg0: i32, %arg1: i32) -> (i32, i32) {
    %c0_i32 = arith.constant 0 : i32
    %c0_i32_0 = arith.constant 0 : i32
    return %arg0, %c0_i32 : i32, i32
  }
  func.func @transform_1(%arg0: i32, %arg1: i32) -> (i32, i32) {
    %c0_i32 = arith.constant 0 : i32
    %c0_i32_0 = arith.constant 0 : i32
    return %c0_i32, %arg1 : i32, i32
  }
  func.func @transform_2(%arg0: i32, %arg1: i32) -> (i32, i32) {
    %c0_i32 = arith.constant 0 : i32
    %c0_i32_0 = arith.constant 0 : i32
    return %c0_i32, %arg1 : i32, i32
  }
  func.func @transform_3(%arg0: i32, %arg1: i32) -> (i32, i32) {
    %c0_i32 = arith.constant 0 : i32
    %c0_i32_0 = arith.constant 0 : i32
    %c0_i32_1 = arith.constant 0 : i32
    return %c0_i32, %c0_i32_0 : i32, i32
  }
  func.func @transform_4(%arg0: i32, %arg1: i32) -> (i32, i32) {
    %c0_i32 = arith.constant 0 : i32
    %c0_i32_0 = arith.constant 0 : i32
    %c0_i32_1 = arith.constant 0 : i32
    return %c0_i32, %c0_i32_0 : i32, i32
  }
  func.func @transform_5(%arg0: i32, %arg1: i32) -> (i32, i32) {
    %c0_i32 = arith.constant 0 : i32
    return %arg0, %arg1 : i32, i32
  }
}

</mosaic_0001>

<bundles_post_ra>
// kernel: tpu_custom_call.1
= control target key start
LH: loop header
LB: loop body
LE: loop exit
PB: predicated region body
PF: predicated region fallthrough
CT: control target
= control target key end

     0   :  { %10 = vsyncpa [#allocation3], 0  ;;  %s1431_s0 = inlined_call_operand.hbm [shape: bf16[16,256], index: 0, kind: input, shape index: {}]   ;;  %s1432_s1 = inlined_call_operand.hbm [shape: bf16[256,512], index: 1, kind: input, shape index: {}]   ;;  %s1433_s2 = inlined_call_operand.vmem [shape: f32[1,512], index: 2, kind: input, shape index: {}]   ;;  %s1434_s3 = inlined_call_operand.vmem [shape: f32[1,128], index: 3, kind: input, shape index: {}]   ;;  %s1435_s4 = inlined_call_operand.vmem [shape: f32[1,128], index: 4, kind: input, shape index: {}]   ;;  %s1436_s5 = inlined_call_operand.hbm [shape: bf16[16,512], index: 5, kind: output, shape index: {}]  }
   0x1   :  { %11 = vsyncpa [#allocation6], 0 }
   0x2   :  { %13 = vsyncpa [#allocation6 + $0x1], 0 }
   0x3   :  { %14 = vsyncpa [#allocation4], 0 }
   0x4   :  { %16 = vsyncpa [#allocation4 + $0x1], 0  ;;  %s1161_s18 = smov 0   ;;  %s1163_s19 = smov 0  }
   0x5   :  { %s1165_s20 = smov 0   ;;  %s1167_s21 = smov 0  }
   0x6   :  { %s1169_s22 = smov 0   ;;  %s1171_s23 = smov 0  }
   0x7 LB: > { %1447 = sst [smem:[#allocation11_spill]] %s1120_s23  ;;  %s774_s24 = sadd.s32 4294967295, %s1120_s23   ;;  %s1120_s23 = sphi %s1171_s23, %s22_s23   ;;  %s1116_s22 = sphi %s1169_s22, %s1470_s22   ;;  %s1112_s21 = sphi %s1167_s21, %s1469_s21   ;;  %s1108_s20 = sphi %s1165_s20, %s1468_s20   ;;  %s1104_s19 = sphi %s1163_s19, %s1467_s19   ;;  %s1100_s18 = sphi %s1161_s18, %s1466_s18  }
   0x8   : > { %s775_s25 = sadd.s32 4294967294, %s1120_s23   ;;  %p74_p0 = scmp.ne.s32.totalorder %s1108_s20, %s1104_s19 }
   0x9   : > { %p75_p1 = scmp.eq.s32.totalorder %s1120_s23, 0  ;;  %p80_p2 = scmp.ne.s32.totalorder %s1104_s19, %s1100_s18 }
   0xa   : > { %p1198_p3 = scmp.eq.s32.totalorder %s774_s24, 0  ;;  %p174_p5 = scmp.eq.s32.totalorder %s774_s24, 1 }
   0xb   : > { %p1202_p4 = por %p75_p1, %p74_p0  ;;  %p180_p7 = scmp.eq.s32.totalorder %s775_s25, 1 }
   0xc   : > { %s1448_s26 = scalar_select %p1198_p3, 1, 0 }
   0xd   : > { %p1208_p6 = por %p1198_p3, %p80_p2  ;;  %p1212_p8 = por %p174_p5, %p74_p0 }
   0xe   : > { %p776_p9 = scmp.ge.s32.totalorder %s1120_s23, 1  ;;  %p1217_p10 = por %p180_p7, %p80_p2 }
   0xf   : > { %s1450_s28 = scalar_select %p1208_p6, 1, 0 }
  0x10   : > { %s1451_s29 = scalar_select %p1212_p8, 1, 0 }
  0x11   : > { %s1452_s30 = scalar_select %p1217_p10, 1, 0 }
  0x12   : > { %p187_p11 = scmp.lt.s32.totalorder %s1120_s23, 3  ;;  %s1122_s7 = smov [#allocation2]  }
  0x13   : > { %s203_s8 = sshll.u32 %s1122_s7, 4  ;;  %p859_p1 = scmp.lt.s32.totalorder %s1120_s23, 2  ;;  %s1226_s8 = int_to_ptr.vmem [resolvable:$true] %s203_s8 }
  0x14   : > { %p1222_p12 = pnand %p776_p9, %p187_p11  ;;  %s31_s11 = sadd.s32 1, %s1116_s22 }
  0x15   : > { %p1240_p2 = pnand %p859_p1, %p1202_p4  ;;  %s976_s14 = scalar_lea.hbm %s1431_s0, 256 }
  0x16   : > { %s1453_s6 = scalar_select %p1222_p12, 1, 0 }
  0x17   : > { %p846_p13 = pneg %p1222_p12  ;;  %p977_p7 = scmp.ne.s32.totalorder %s1431_s0, %s976_s14 }
  0x18   : > { %s1455_s10 = scalar_select %p1240_p2, 1, 0 }
  0x19   : > { %p1234_p5 = pnand %p846_p13, %p1198_p3  ;;  %p983_p4 = scmp.lt.u32.totalorder %s976_s14, %s1431_s0 }
  0x1b   : > { %p978_p9 = pneg %p1234_p5 }
  0x1d   : > { %p979_p11 = pnand %p978_p9, %p977_p7 }
  0x1f   : > { %p980_p13 = pneg %p979_p11 }
  0x21   : > { %p985_p1 = pnand %p983_p4, %p980_p13 }
  0x23   : > { %988 = shalt.err (!%p985_p1)
}
  0x24   : > { %s989_s25 = scalar_lea.vmem %s1226_s8, 256  ;;  %p997_p6 = scmp.lt.s32.totalorder %s1226_s8, %s1226_s8 }
  0x25   : > { %p990_p0 = scmp.ne.s32.totalorder %s1226_s8, %s989_s25  ;;  %p998_p3 = scmp.lt.s32.totalorder %s989_s25, %s989_s25 }
  0x27   : > { %p992_p10 = pnand %p990_p0, %p978_p9  ;;  %p999_p12 = por %p998_p3, %p997_p6 }
  0x29   : > { %p993_p8 = pneg %p992_p10 }
  0x2b   : > { %p1000_p2 = pnand %p999_p12, %p993_p8 }
  0x2d   : > { %1003 = shalt.err (!%p1000_p2)
}
  0x2e   : > { %s1445_s27 = smov 128   ;;  %s1446_s7 = smov 8  }
  0x2f   : > { %849 = dma.hbm_to_vmem [thread:$0]  (!%p1234_p5), %s1431_s0, 256, %s1226_s8, [#allocation3], %s1445_s27, %s1445_s27, %s1446_s7  }
  0x30   : > { %p32_p3 = scmp.ge.s32.totalorder %s31_s11, 2  ;;  %s67_s14 = sadd.s32 1, %s1108_s20 }
  0x31   : > { %s223_s15 = sand.u32 1, %s1108_s20   ;;  %s832_s24 = sshll.u32 %s1116_s22, 7 }
  0x32   : > { %s1472_s11 = smov (%p32_p3, %s31_s11), 0  ;;  %s779_s16 = sshll.u32 %s223_s15, 8 }
  0x33   : > { %s64_s17 = ssub.s32 %s1116_s22, %s1472_s11  ;;  %s1279_s23 = scalar_lea.hbm %s1432_s1, %s832_s24 }
  0x34   : > { %p65_p6 = scmp.eq.s32.totalorder %s64_s17, 0  ;;  %s227_s8 = scalar_lea.vmem [#allocation5], %s779_s16 }
  0x35   : > { %s234_s12 = sshll.u32 %s227_s8, 4  ;;  %s1286_s27 = scalar_lea.sflag [#allocation6], %s223_s15  ;;  %s1284_s12 = int_to_ptr.vmem [resolvable:$true] %s234_s12 }
  0x36   : > { %s1282_s13 = scalar_select %p65_p6, %s1108_s20, %s67_s14  }
  0x37   : > { %s1004_s7 = scalar_lea.hbm %s1279_s23, 4096  ;;  %p1456_p10 = scmp.ne.s32.totalorder %s1455_s10, 0 }
  0x38   : > { %p1005_p8 = scmp.ne.s32.totalorder %s1279_s23, %s1004_s7  ;;  %s1009_s9 = scalar_lea.hbm %s1432_s1, 8192 }
  0x39   : > { %p1006_p12 = pneg %p1456_p10  ;;  %p1010_p2 = scmp.lt.u32.totalorder %s1279_s23, %s1432_s1 }
  0x3a   : > { %p1011_p7 = scmp.lt.u32.totalorder %s1009_s9, %s1004_s7  ;;  %p1013_p11 = scmp.lt.u32.totalorder %s1004_s7, %s1279_s23 }
  0x3b   : > { %p1007_p0 = pnand %p1006_p12, %p1005_p8 }
  0x3c   : > { %p1012_p9 = por %p1011_p7, %p1010_p2 }
  0x3d   : > { %p1008_p5 = pneg %p1007_p0 }
  0x3e   : > { %p1014_p13 = por %p1013_p11, %p1012_p9 }
  0x40   : > { %p1015_p4 = pnand %p1014_p13, %p1008_p5 }
  0x42   : > { %1018 = shalt.err (!%p1015_p4)
}
  0x43   : > { %s1019_s14 = scalar_lea.vmem %s1284_s12, 4096  ;;  %s1125_s15 = smov [#allocation5]  }
  0x44   : > { %p1020_p1 = scmp.ne.s32.totalorder %s1284_s12, %s1019_s14  ;;  %s1024_s8 = sshll.u32 %s1125_s15, 4  ;;  %s1025_s8 = int_to_ptr.vmem [resolvable:$false] %s1024_s8 }
  0x45   : > { %s1026_s17 = scalar_lea.vmem %s1025_s8, 8192  ;;  %p1027_p8 = scmp.lt.s32.totalorder %s1284_s12, %s1025_s8 }
  0x46   : > { %p1022_p3 = pnand %p1020_p1, %p1006_p12  ;;  %p1028_p0 = scmp.lt.s32.totalorder %s1026_s17, %s1019_s14 }
  0x48   : > { %p1023_p6 = pneg %p1022_p3  ;;  %p1029_p2 = por %p1028_p0, %p1027_p8 }
  0x4a   : > { %p1030_p7 = pnand %p1029_p2, %p1023_p6 }
  0x4c   : > { %1033 = shalt.err (!%p1030_p7)
}
  0x4d   : > { %s1126_s7 = smov 256   ;;  %s1457_s24 = smov 8  }
  0x4e   : > { %s1458_s9 = smov 128   ;;  %p1459_p12 = scmp.ne.s32.totalorder %s1453_s6, 0 }
  0x4f   : > { %853 = dma.hbm_to_vmem [thread:$0]  (!%p1456_p10), %s1279_s23, 4096, %s1284_s12, %s1286_s27, %s1126_s7, %s1458_s9, %s1457_s24  }
  0x50   : > { %254 = sbr.rel (%p1459_p12) target bundleno = 708 (0x2c4), region = 40  ;;  %p1460_p5 = scmp.ne.s32.totalorder (!%p1459_p12), %s1448_s26, 0 }
  0x57   : > { %1087 = dma.done.wait (%p1460_p5), [#allocation3], 256  }
  0x58   : > { %1089 = vsyncadd (%p1460_p5), [#allocation3], 4294967040  ;;  %s1323_s16 = sand.u32 1, %s1104_s19   ;;  %p1461_p10 = scmp.ne.s32.totalorder %s1450_s28, 0 }
  0x59   : > { %s784_s10 = sshll.u32 %s1323_s16, 8  ;;  %s261_s25 = scalar_lea.sflag [#allocation6], %s1323_s16 }
  0x5a   : > { %s1327_s14 = scalar_lea.vmem [#allocation5], %s784_s10 }
  0x5b   : > { %1091 = dma.done.wait (%p1461_p10), %s261_s25, 4096  }
  0x5c   : > { %1093 = vsyncadd (%p1461_p10), %s261_s25, 4294963200  ;;  %v917_v0 = vld [vmem:[%s1327_s14 + $0x4] ss:$8 sps:$4 sm:$0xff]   ;;  %v919_v1 = vld [vmem:[%s1327_s14] ss:$8 sps:$4 sm:$0xff]   ;;  %s786_s23 = sshll.u32 %s1112_s21, 1  ;;  %v340_v34 = vlaneseq }
  0x5d   : > { %520 = vmatprep.subr.bf16.mxu0 %v917_v0  ;;  %v920_v2 = vld [vmem:[%s1327_s14 + $0x14] ss:$8 sps:$4 sm:$0xff]   ;;  %v922_v3 = vld [vmem:[%s1327_s14 + $0x10] ss:$8 sps:$4 sm:$0xff]   ;;  %v923_v4 = vld [vmem:[%s1327_s14 + $0x24] ss:$8 sps:$4 sm:$0xff]  }
  0x5e   : > { %521 = vmatpush1.bf16.msra.mxu0 %v919_v1  ;;  %v925_v5 = vld [vmem:[%s1327_s14 + $0x20] ss:$8 sps:$4 sm:$0xff]   ;;  %v926_v6 = vld [vmem:[%s1327_s14 + $0x34] ss:$8 sps:$4 sm:$0xff]   ;;  %v928_v7 = vld [vmem:[%s1327_s14 + $0x30] ss:$8 sps:$4 sm:$0xff]  }
  0x5f   : > { %522 = vmatprep.subr.bf16.mxu0 %v920_v2  ;;  %v929_v8 = vld [vmem:[%s1327_s14 + $0x44] ss:$8 sps:$4 sm:$0xff]   ;;  %v931_v9 = vld [vmem:[%s1327_s14 + $0x40] ss:$8 sps:$4 sm:$0xff]   ;;  %v932_v10 = vld [vmem:[%s1327_s14 + $0x54] ss:$8 sps:$4 sm:$0xff]  }
  0x60   : > { %v934_v11 = vld [vmem:[%s1327_s14 + $0x50] ss:$8 sps:$4 sm:$0xff]   ;;  %v935_v12 = vld [vmem:[%s1327_s14 + $0x64] ss:$8 sps:$4 sm:$0xff]   ;;  %v967_v13 = vld [vmem:[#allocation2 + $0x4] ss:$8 sps:$4 sm:$0xff]  }
  0x61   : > { %v937_v14 = vld [vmem:[%s1327_s14 + $0x60] ss:$8 sps:$4 sm:$0xff]   ;;  %v938_v15 = vld [vmem:[%s1327_s14 + $0x74] ss:$8 sps:$4 sm:$0xff]   ;;  %552 = vmatprep.mubr.bf16.mxu0 %v967_v13  ;;  %v940_v16 = vld [vmem:[%s1327_s14 + $0x70] ss:$8 sps:$4 sm:$0xff]  }
  0x62   : > { %523 = vmatpush1.bf16.msra.mxu0 %v922_v3  ;;  %v941_v17 = vld [vmem:[%s1327_s14 + $0x84] ss:$8 sps:$4 sm:$0xff]   ;;  %v943_v18 = vld [vmem:[%s1327_s14 + $0x80] ss:$8 sps:$4 sm:$0xff]   ;;  %v944_v19 = vld [vmem:[%s1327_s14 + $0x94] ss:$8 sps:$4 sm:$0xff]  }
  0x63   : > { %524 = vmatprep.subr.bf16.mxu0 %v923_v4  ;;  %v946_v20 = vld [vmem:[%s1327_s14 + $0x90] ss:$8 sps:$4 sm:$0xff]   ;;  %v947_v21 = vld [vmem:[%s1327_s14 + $0xa4] ss:$8 sps:$4 sm:$0xff]   ;;  %v949_v22 = vld [vmem:[%s1327_s14 + $0xa0] ss:$8 sps:$4 sm:$0xff]  }
  0x64   : > { %v950_v23 = vld [vmem:[%s1327_s14 + $0xb4] ss:$8 sps:$4 sm:$0xff]   ;;  %v952_v24 = vld [vmem:[%s1327_s14 + $0xb0] ss:$8 sps:$4 sm:$0xff]   ;;  %v953_v25 = vld [vmem:[%s1327_s14 + $0xc4] ss:$8 sps:$4 sm:$0xff]  }
  0x65   : > { %v955_v26 = vld [vmem:[%s1327_s14 + $0xc0] ss:$8 sps:$4 sm:$0xff]   ;;  %v956_v27 = vld [vmem:[%s1327_s14 + $0xd4] ss:$8 sps:$4 sm:$0xff]   ;;  %v958_v28 = vld [vmem:[%s1327_s14 + $0xd0] ss:$8 sps:$4 sm:$0xff]  }
  0x66   : > { %525 = vmatpush1.bf16.msra.mxu0 %v925_v5  ;;  %v959_v29 = vld [vmem:[%s1327_s14 + $0xe4] ss:$8 sps:$4 sm:$0xff]   ;;  %v961_v30 = vld [vmem:[%s1327_s14 + $0xe0] ss:$8 sps:$4 sm:$0xff]   ;;  %v962_v31 = vld [vmem:[%s1327_s14 + $0xf4] ss:$8 sps:$4 sm:$0xff]  }
  0x67   : > { %526 = vmatprep.subr.bf16.mxu0 %v926_v6  ;;  %v964_v32 = vld [vmem:[%s1327_s14 + $0xf0] ss:$8 sps:$4 sm:$0xff]   ;;  %p298_p9 = scmp.lt.s32.totalorder %s786_s23, 3  ;;  %v341_v35 = vshrl.u32 %v340_v34, 7  ;;  %s785_s17 = sshll.u32 %s1323_s16, 4 }
  0x68   : > { %v965_v33 = vld [vmem:[#allocation2] ss:$8 sps:$4 sm:$0xff]   ;;  %s294_s7 = scalar_lea.vmem [#allocation7], %s785_s17  ;;  %s837_s24 = sshll.u32 %s1112_s21, 7 }
  0x69   : > { %s1474_s23 = smov (!%p298_p9, %s786_s23), 3  ;;  %v342_v36 = vsub.s32 0, %v341_v35  ;;  %v346_v38 = vsub.s32 1, %v341_v35  ;;  %s667_s9 = sshll.u32 %s294_s7, 4  ;;  %s1382_s9 = int_to_ptr.vmem [resolvable:$true] %s667_s9 }
  0x6a   : > { %527 = vmatpush1.bf16.msra.mxu0 %v928_v7  ;;  %s300_s6 = scalar_lea.vmem %s1433_s2, %s1474_s23  ;;  %s1380_s14 = scalar_lea.hbm %s1436_s5, %s837_s24 }
  0x6b   : > { %528 = vmatprep.subr.bf16.mxu0 %v929_v8  ;;  %v338_v37 = vld [vmem:[%s300_s6] sm:$0x3]  ;;  %s651_s21 = scalar_lea.sflag [#allocation4], %s1323_s16  ;;  %s1034_s23 = scalar_lea.vmem %s1382_s9, 256 }
  0x6c   : > { %v343_v39 = vrot.slane %v338_v37, %v342_v36  ;;  %v347_v40 = vrot.slane %v338_v37, %v346_v38  ;;  %p1035_p11 = scmp.ne.s32.totalorder %s1382_s9, %s1034_s23  ;;  %p1462_p13 = scmp.ne.s32.totalorder %s1451_s29, 0 }
  0x6d   : > { %s1127_s26 = smov [#allocation7]  }
  0x6e   : > { %529 = vmatpush1.bf16.msra.mxu0 %v931_v9  ;;  %p1036_p4 = pnand %p1035_p11, %p1462_p13  ;;  %s1038_s28 = sshll.u32 %s1127_s26, 4  ;;  %s1039_s28 = int_to_ptr.vmem [resolvable:$false] %s1038_s28 }
  0x6f   : > { %530 = vmatprep.subr.bf16.mxu0 %v932_v10  ;;  %s1040_s6 = scalar_lea.vmem %s1039_s28, 512  ;;  %p1041_p3 = scmp.lt.s32.totalorder %s1382_s9, %s1039_s28 }
  0x70   : > { %p1037_p1 = pneg %p1036_p4  ;;  %p1042_p6 = scmp.lt.s32.totalorder %s1040_s6, %s1034_s23 }
  0x72   : > { %531 = vmatpush1.bf16.msra.mxu0 %v934_v11  ;;  %p1043_p8 = por %p1042_p6, %p1041_p3 }
  0x73   : > { %532 = vmatprep.subr.bf16.mxu0 %v935_v12 }
  0x74   : > { %p1044_p0 = pnand %p1043_p8, %p1037_p1 }
  0x76   : > { %533 = vmatpush1.bf16.msra.mxu0 %v937_v14  ;;  %v821_v14 = vld [vmem:[%s1434_s3] ss:$0 sm:$0xff] }
  0x77   : > { %534 = vmatprep.subr.bf16.mxu0 %v938_v15 }
  0x7a   : > { %535 = vmatpush1.bf16.msra.mxu0 %v940_v16  ;;  %v822_v16 = vld [vmem:[%s1435_s4] ss:$0 sm:$0xff] }
  0x7b   : > { %536 = vmatprep.subr.bf16.mxu0 %v941_v17 }
  0x7e   : > { %537 = vmatpush1.bf16.msra.mxu0 %v943_v18 }
  0x7f   : > { %538 = vmatprep.subr.bf16.mxu0 %v944_v19 }
  0x82   : > { %539 = vmatpush1.bf16.msra.mxu0 %v946_v20 }
  0x83   : > { %540 = vmatprep.subr.bf16.mxu0 %v947_v21 }
  0x86   : > { %541 = vmatpush1.bf16.msra.mxu0 %v949_v22 }
  0x87   : > { %542 = vmatprep.subr.bf16.mxu0 %v950_v23 }
  0x8a   : > { %543 = vmatpush1.bf16.msra.mxu0 %v952_v24 }
  0x8b   : > { %544 = vmatprep.subr.bf16.mxu0 %v953_v25 }
  0x8e   : > { %545 = vmatpush1.bf16.msra.mxu0 %v955_v26 }
  0x8f   : > { %546 = vmatprep.subr.bf16.mxu0 %v956_v27 }
  0x92   : > { %547 = vmatpush1.bf16.msra.mxu0 %v958_v28 }
  0x93   : > { %548 = vmatprep.subr.bf16.mxu0 %v959_v29 }
  0x96   : > { %549 = vmatpush1.bf16.msra.mxu0 %v961_v30 }
  0x97   : > { %550 = vmatprep.subr.bf16.mxu0 %v962_v31 }
  0x9a   : > { %551 = vmatpush1.bf16.msra.mxu0 %v964_v32 }
  0x9d   : > { %553 = vmatmul.mubr.bf16.vlgmr.msra.gmra.mrb[0].mxu0 %v965_v33 }
 0x170   : > { %v554_v41 = vpop.f32.mrb[0].mxu0 }
 0x171   : > { %v555_v42 = vadd.f32 %v554_v41, %v343_v39  ;;  %v556_v43 = vpop.f32.mrb[1].mxu0 }
 0x172   : > { %v557_v44 = vadd.f32 %v556_v43, %v347_v40  ;;  %v558_v45 = vpop.f32.mrb[2].mxu0 }
 0x173   : > { %v560_v46 = vpop.f32.mrb[3].mxu0  ;;  %565 = vadd.xlane.f32.xlu0 %v555_v42  ;;  %v559_v47 = vadd.f32 %v558_v45, %v343_v39 }
 0x174   : > { %614 = vadd.xlane.f32.xlu1 %v557_v44  ;;  %v561_v48 = vadd.f32 %v560_v46, %v347_v40 }
 0x177   : > { %567 = vadd.xlane.f32.xlu0 %v559_v47 }
 0x178   : > { %616 = vadd.xlane.f32.xlu1 %v561_v48 }
 0x200   : > { %v566_v49 = vpop.xlane.xlu0 %565 }
 0x201   : > { %v570_v50 = vmul.f32 0.0078125, %v566_v49  ;;  %v615_v51 = vpop.xlane.xlu1 %614 }
 0x202   : > { %v618_v52 = vmul.f32 0.0078125, %v615_v51 }
 0x203   : > { %v572_v53 = vsub.f32 %v555_v42, %v570_v50 }
 0x204   : > { %v568_v54 = vpop.xlane.xlu0 %567  ;;  %v620_v55 = vsub.f32 %v557_v44, %v618_v52 }
 0x205   : > { %v571_v56 = vmul.f32 0.0078125, %v568_v54  ;;  %v617_v57 = vpop.xlane.xlu1 %616  ;;  %v574_v58 = vmul.f32 %v572_v53, %v572_v53 }
 0x206   : > { %v619_v59 = vmul.f32 0.0078125, %v617_v57  ;;  %v622_v62 = vmul.f32 %v620_v55, %v620_v55 }
 0x207   : > { %v573_v60 = vsub.f32 %v559_v47, %v571_v56  ;;  %576 = vadd.xlane.f32.xlu0 %v574_v58 }
 0x208   : > { %v621_v61 = vsub.f32 %v561_v48, %v619_v59 }
 0x209   : > { %v575_v63 = vmul.f32 %v573_v60, %v573_v60 }
 0x20a   : > { %v623_v0 = vmul.f32 %v621_v61, %v621_v61 }
 0x20b   : > { %624 = vadd.xlane.f32.xlu0 %v622_v62  ;;  %578 = vadd.xlane.f32.xlu1 %v575_v63 }
 0x20f   : > { %626 = vadd.xlane.f32.xlu1 %v623_v0 }
 0x294   : > { %v577_v1 = vpop.xlane.xlu0 %576 }
 0x295   : > { %v580_v2 = vmul.f32 0.0078125, %v577_v1 }
 0x297   : > { %v582_v3 = vadd.f32 1e-05, %v580_v2 }
 0x298   : > { %v579_v4 = vpop.xlane.xlu1 %578  ;;  %v625_v5 = vpop.xlane.xlu0 %624 }
 0x299   : > { %968 = vrsqrt.f32 %v582_v3  ;;  %v581_v6 = vmul.f32 0.0078125, %v579_v4  ;;  %v628_v7 = vmul.f32 0.0078125, %v625_v5 }
 0x29b   : > { %v583_v8 = vadd.f32 1e-05, %v581_v6  ;;  %v630_v9 = vadd.f32 1e-05, %v628_v7 }
 0x29c   : > { %v627_v10 = vpop.xlane.xlu1 %626 }
 0x29d   : > { %970 = vrsqrt.f32 %v583_v8  ;;  %v629_v11 = vmul.f32 0.0078125, %v627_v10 }
 0x29e   : > { %972 = vrsqrt.f32 %v630_v9 }
 0x29f   : > { %v631_v12 = vadd.f32 1e-05, %v629_v11 }
 0x2a1   : > { %974 = vrsqrt.f32 %v631_v12 }
 0x2a3   : > { %v969_v13 = vpop.eup %968 }
 0x2a4   : > { %v586_v15 = vmul.f32 %v969_v13, %v572_v53 }
 0x2a6   : > { %v594_v17 = vmul.f32 %v821_v14, %v586_v15 }
 0x2a7   : > { %v971_v18 = vpop.eup %970 }
 0x2a8   : > { %v973_v19 = vpop.eup %972  ;;  %v602_v20 = vadd.f32 %v822_v16, %v594_v17  ;;  %v587_v21 = vmul.f32 %v971_v18, %v573_v60 }
 0x2a9   : > { %v634_v22 = vmul.f32 %v973_v19, %v620_v55 }
 0x2aa   : > { %v833_v23 = vpack.c.bf16 %v602_v20, %v602_v20  ;;  %v595_v24 = vmul.f32 %v821_v14, %v587_v21 }
 0x2ab   : > { %v975_v25 = vpop.eup %974  ;;  %v636_v26 = vmul.f32 %v821_v14, %v634_v22 }
 0x2ac   : > { %612 = vst [vmem:[%s294_s7] sm:$0xf] %v833_v23  ;;  %v603_v27 = vadd.f32 %v822_v16, %v595_v24  ;;  %v635_v28 = vmul.f32 %v975_v25, %v621_v61 }
 0x2ad   : > { %v638_v29 = vadd.f32 %v822_v16, %v636_v26 }
 0x2ae   : > { %v834_v30 = vpack.c.bf16 %v603_v27, %v603_v27  ;;  %v637_v31 = vmul.f32 %v821_v14, %v635_v28 }
 0x2af   : > { %v835_v32 = vpack.c.bf16 %v638_v29, %v638_v29 }
 0x2b0   : > { %613 = vst [vmem:[%s294_s7 + $0x8] sm:$0xf] %v834_v30  ;;  %v639_v33 = vadd.f32 %v822_v16, %v637_v31 }
 0x2b1   : > { %648 = vst [vmem:[%s294_s7 + $0x4] sm:$0xf] %v835_v32 }
 0x2b2   : > { %v836_v34 = vpack.c.bf16 %v639_v33, %v639_v33 }
 0x2b4   : > { %649 = vst [vmem:[%s294_s7 + $0xc] sm:$0xf] %v836_v34 }
 0x2b5   : > { %1047 = shalt.err (!%p1044_p0)
}
 0x2b6   : > { %s1048_s27 = scalar_lea.hbm %s1380_s14, 256  ;;  %s1052_s8 = scalar_lea.hbm %s1436_s5, 512 }
 0x2b7   : > { %p1049_p2 = scmp.ne.s32.totalorder %s1380_s14, %s1048_s27  ;;  %p1053_p5 = scmp.lt.u32.totalorder %s1380_s14, %s1436_s5 }
 0x2b8   : > { %p1054_p10 = scmp.lt.u32.totalorder %s1052_s8, %s1048_s27  ;;  %p1056_p11 = scmp.lt.u32.totalorder %s1048_s27, %s1380_s14 }
 0x2b9   : > { %p1050_p7 = pnand %p1049_p2, %p1462_p13 }
 0x2ba   : > { %p1055_p9 = por %p1054_p10, %p1053_p5 }
 0x2bb   : > { %p1051_p12 = pneg %p1050_p7 }
 0x2bc   : > { %p1057_p4 = por %p1056_p11, %p1055_p9 }
 0x2be   : > { %p1058_p1 = pnand %p1057_p4, %p1051_p12 }
 0x2c0   : > { %1061 = shalt.err (!%p1058_p1)
}
 0x2c1   : > { %s1128_s24 = smov 128   ;;  %s1129_s10 = smov 256  }
 0x2c2   : > { %s1130_s25 = smov 8  }
 0x2c3   : > { %844 = dma.vmem_to_hbm [thread:$0]  (%p1462_p13), %s1382_s9, 256, %s1380_s14, %s651_s21, %s1128_s24, %s1129_s10, %s1130_s25  }
 0x2c4 PF: > { %s1463_s23 = sld [smem:[#allocation11_spill]]  ;;  %s682_s26 = sand.u32 1, %s1100_s18  }
 0x2c5   : > { %p1464_p3 = scmp.ne.s32.totalorder %s1452_s30, 0  ;;  %s683_s28 = scalar_lea.sflag [#allocation4], %s682_s26 }
 0x2ca   : > { %p1465_p6 = scmp.ge.s32.totalorder %s1463_s23, 2 }
 0x2cc   : > { %p855_p8 = pnand %p1465_p6, %p1464_p3 }
 0x2ce   : > { %1095 = dma.done.wait (!%p855_p8), %s683_s28, 256  }
 0x2cf   : > { %1097 = vsyncadd (!%p855_p8), %s683_s28, 4294967040  ;;  %s22_s23 = sadd.s32 1, %s1463_s23   ;;  %s1466_s18 = smov %s1104_s19 }
 0x2d0   : > { %p19_p0 = scmp.ge.s32.totalorder %s22_s23, 4   ;;  %s1467_s19 = smov %s1108_s20 }
 0x2d1   : > { %s1468_s20 = smov %s1282_s13  ;;  %s1469_s21 = smov %s1116_s22 }
 0x2d2   : > { %s1470_s22 = smov %s1472_s11  ;;  %21 = sbr.rel (!%p19_p0) target bundleno = 7 (0x7), region = 94 }
 0x2d9   :  { %688 = vsyncpa [#allocation3], 1 }
 0x2da   :  { %690 = vsyncpa [#allocation3 + $0x1], 1 }
 0x2db   :  { %691 = vsyncpa [#allocation6], 1 }
 0x2dc   :  { %693 = vsyncpa [#allocation6 + $0x1], 1 }
 0x2dd   :  { %694 = vsyncpa [#allocation4], 1 }
 0x2de   :  { %696 = vsyncpa [#allocation4 + $0x1], 1 }

</bundles_post_ra>
